<compile_context>
chip_gen: v7x
topology: tpu7x:2x2x1
jax: 0.10.0
libtpu: 0.0.40
codegen_flags: <defaults>
</compile_context>

<pallas_src>
import jax
import jax.numpy as jnp
from jax import lax
from jax.experimental import pallas as pl
from jax.experimental.pallas import tpu as pltpu

HIDDEN_SIZE = 64
Types = [11, 11, 10, 0, 0, 10, 0]
nAgents = len(Types)
INPUT_SIZE = 2 * nAgents  # 14


def _round_up(n, m):
    return ((n + m - 1) // m) * m


def _feedforward_kernel(x_ref, w1_ref, b1_ref, w2_ref, b2_ref, o_ref):
    # x_ref:  (TB, INPUT_SIZE)  bf16      w1_ref: (INPUT_SIZE, HIDDEN)  bf16
    # b1_ref: (1, HIDDEN)       f32       w2_ref: (1, HIDDEN)           f32
    # b2_ref: (1,) f32 in SMEM            o_ref:  (1, TB)               f32
    x = x_ref[...]
    # fc1 on the MXU, f32 accumulation, then ReLU on the VPU.
    h = jnp.dot(x, w1_ref[...], preferred_element_type=jnp.float32) + b1_ref[...]
    h = jnp.maximum(h, 0.0)                                  # (TB, HIDDEN) f32
    # fc2: contract hidden dim of w2 (1,H) with hidden dim of h (TB,H) -> (1, TB).
    # Result lands lane-dense in batch so the output store is full-width / unmasked.
    y = lax.dot_general(
        w2_ref[...], h,
        dimension_numbers=(((1,), (1,)), ((), ())),
        preferred_element_type=jnp.float32,
    )
    y = y + b2_ref[0]
    o_ref[...] = jax.nn.sigmoid(y).astype(o_ref.dtype)


def feedforward(x, w1, b1, w2, b2, *, block_b=2048):
    """x: [B, INPUT_SIZE]; w1: [HIDDEN, INPUT] (PyTorch layout); b1: [HIDDEN];
    w2: [1, HIDDEN]; b2: [1]. Returns [B, 1] f32."""
    B = x.shape[0]

    # Batch-tile size. Small B -> single full-array block (full dims satisfy the
    # (8,128) rule). Large B -> 128-aligned tiles, pad the batch to a multiple.
    if B <= block_b:
        tb = max(8, _round_up(B, 8))
    else:
        assert block_b % 128 == 0, "block_b must be a multiple of 128"
        tb = block_b
    b_pad = _round_up(B, tb)
    n_blocks = b_pad // tb

    # bf16 for the fc1 operands (halves HBM traffic on x); accumulation stays f32.
    x_bf = jnp.asarray(x, jnp.float32).astype(jnp.bfloat16)
    if b_pad != B:
        x_bf = jnp.pad(x_bf, ((0, b_pad - B), (0, 0)))
    w1_t = jnp.asarray(w1, jnp.float32).T.astype(jnp.bfloat16)       # (INPUT, HIDDEN)
    b1_2d = jnp.asarray(b1, jnp.float32).reshape(1, HIDDEN_SIZE)
    w2_2d = jnp.asarray(w2, jnp.float32).reshape(1, HIDDEN_SIZE)      # no transpose
    b2_1d = jnp.asarray(b2, jnp.float32).reshape(1)

    out = pl.pallas_call(
        _feedforward_kernel,
        out_shape=jax.ShapeDtypeStruct((1, b_pad), jnp.float32),
        grid_spec=pl.GridSpec(
            grid=(n_blocks,),
            in_specs=[
                pl.BlockSpec((tb, INPUT_SIZE), lambda i: (i, 0)),        # x: batch-tiled
                pl.BlockSpec((INPUT_SIZE, HIDDEN_SIZE), lambda i: (0, 0)),  # W1 resident
                pl.BlockSpec((1, HIDDEN_SIZE), lambda i: (0, 0)),        # b1 resident
                pl.BlockSpec((1, HIDDEN_SIZE), lambda i: (0, 0)),        # w2 resident
                pl.BlockSpec(memory_space=pltpu.MemorySpace.SMEM),       # b2 scalar
            ],
            out_specs=pl.BlockSpec((1, tb), lambda i: (0, i)),           # lane-dense out
        ),
        compiler_params=pltpu.CompilerParams(
            dimension_semantics=("parallel",),   # independent batch blocks (megacore on v7x)
        ),
    )(x_bf, w1_t, b1_2d, w2_2d, b2_1d)

    return out[0, :B].reshape(B, 1)


def _init_params(key):
    # Deterministic init mimicking PyTorch nn.Linear default:
    # U(-1/sqrt(fan_in), 1/sqrt(fan_in)).
    k1, k2, k3, k4 = jax.random.split(key, 4)
    bound1 = 1.0 / jnp.sqrt(float(INPUT_SIZE))
    bound2 = 1.0 / jnp.sqrt(float(HIDDEN_SIZE))
    w1 = jax.random.uniform(k1, (HIDDEN_SIZE, INPUT_SIZE), jnp.float32, -bound1, bound1)
    b1 = jax.random.uniform(k2, (HIDDEN_SIZE,), jnp.float32, -bound1, bound1)
    w2 = jax.random.uniform(k3, (1, HIDDEN_SIZE), jnp.float32, -bound2, bound2)
    b2 = jax.random.uniform(k4, (1,), jnp.float32, -bound2, bound2)
    return w1, b1, w2, b2


if __name__ == "__main__":
    key = jax.random.PRNGKey(0)
    kx1, kx2, kp = jax.random.split(key, 3)

    w1, b1, w2, b2 = _init_params(kp)

    def reference(x):
        # Mirror the kernel's bf16 rounding of x / W1 (accumulation stays f32).
        xr = x.astype(jnp.bfloat16).astype(jnp.float32)
        w1r = w1.astype(jnp.bfloat16).astype(jnp.float32)
        h = jnp.maximum(xr @ w1r.T + b1, 0.0)
        y = jnp.sum(h * w2, axis=-1, keepdims=True) + b2
        return jax.nn.sigmoid(y)

    # Small single-block case.
    B1 = 8
    x1 = jax.random.normal(kx1, (B1, INPUT_SIZE), jnp.float32)
    out1 = jax.block_until_ready(feedforward(x1, w1, b1, w2, b2))
    assert out1.shape == (B1, 1)
    assert jnp.allclose(out1, reference(x1), atol=5e-3)

    # Multi-block + padded-tail case (exercises the batch-tiling path).
    B2 = 300
    x2 = jax.random.normal(kx2, (B2, INPUT_SIZE), jnp.float32)
    out2 = jax.block_until_ready(feedforward(x2, w1, b1, w2, b2, block_b=128))
    assert out2.shape == (B2, 1)
    assert jnp.allclose(out2, reference(x2), atol=5e-3)

    print("KERNEL_OK")
</pallas_src>

<mosaic_0001>
module attributes {stable_mosaic.version = 11 : i64} {
  func.func @_feedforward_kernel(%arg0: i32, %arg1: memref<8x14xbf16, #tpu.memory_space<vmem>>, %arg2: memref<14x64xbf16, #tpu.memory_space<vmem>>, %arg3: memref<1x64xf32, #tpu.memory_space<vmem>>, %arg4: memref<1x64xf32, #tpu.memory_space<vmem>>, %arg5: memref<1xf32, #tpu.memory_space<smem>>, %arg6: memref<1x8xf32, #tpu.memory_space<vmem>>) attributes {dimension_semantics = [#tpu.dimension_semantics<parallel>], iteration_bounds = array<i64: 1>, scalar_prefetch = 0 : i64, scratch_operands = 0 : i64, tpu.core_type = #tpu.core_type<tc>, window_params = [{transform_indices = @transform_0, window_bounds = array<i64: 8, 14>}, {pipeline_mode = #tpu.pipeline_mode<synchronous>, transform_indices = @transform_1, window_bounds = array<i64: 14, 64>}, {pipeline_mode = #tpu.pipeline_mode<synchronous>, transform_indices = @transform_2, window_bounds = array<i64: 1, 64>}, {pipeline_mode = #tpu.pipeline_mode<synchronous>, transform_indices = @transform_3, window_bounds = array<i64: 1, 64>}, {transform_indices = @transform_4, window_bounds = array<i64: 1>}, {transform_indices = @transform_5, window_bounds = array<i64: 1, 8>}]} {
    %c0 = arith.constant 0 : index
    %c0_0 = arith.constant 0 : index
    %0 = vector.load %arg1[%c0, %c0_0] : memref<8x14xbf16, #tpu.memory_space<vmem>>, vector<8x14xbf16>
    %c0_1 = arith.constant 0 : index
    %c0_2 = arith.constant 0 : index
    %1 = vector.load %arg2[%c0_1, %c0_2] : memref<14x64xbf16, #tpu.memory_space<vmem>>, vector<14x64xbf16>
    %cst = arith.constant dense<0.000000e+00> : vector<8x64xf32>
    %2 = tpu.matmul %0, %1, %cst {dimension_numbers = #tpu.dot_dimension_numbers<[1], [0], [0], [1], [0, 0, 1, 1], [], []>} : vector<8x14xbf16>, vector<14x64xbf16>, vector<8x64xf32> -> vector<8x64xf32>
    %c0_3 = arith.constant 0 : index
    %c0_4 = arith.constant 0 : index
    %3 = vector.load %arg3[%c0_3, %c0_4] : memref<1x64xf32, #tpu.memory_space<vmem>>, vector<1x64xf32>
    %4 = vector.broadcast %3 : vector<1x64xf32> to vector<8x64xf32>
    %5 = arith.addf %2, %4 : vector<8x64xf32>
    %cst_5 = arith.constant 0.000000e+00 : f32
    %6 = vector.broadcast %cst_5 : f32 to vector<8x64xf32>
    %7 = arith.maximumf %5, %6 : vector<8x64xf32>
    %c0_6 = arith.constant 0 : index
    %c0_7 = arith.constant 0 : index
    %8 = vector.load %arg4[%c0_6, %c0_7] : memref<1x64xf32, #tpu.memory_space<vmem>>, vector<1x64xf32>
    %cst_8 = arith.constant dense<0.000000e+00> : vector<1x8xf32>
    %9 = tpu.matmul %8, %7, %cst_8 {dimension_numbers = #tpu.dot_dimension_numbers<[1], [1], [0], [0], [0, 0, 1, 0], [], []>} : vector<1x64xf32>, vector<8x64xf32>, vector<1x8xf32> -> vector<1x8xf32>
    %c0_9 = arith.constant 0 : index
    %10 = memref.load %arg5[%c0_9] : memref<1xf32, #tpu.memory_space<smem>>
    %11 = vector.broadcast %10 : f32 to vector<1x8xf32>
    %12 = arith.addf %9, %11 : vector<1x8xf32>
    %13 = arith.negf %12 : vector<1x8xf32>
    %14 = math.exp %13 : vector<1x8xf32>
    %cst_10 = arith.constant 1.000000e+00 : f32
    %15 = vector.broadcast %cst_10 : f32 to vector<1x8xf32>
    %16 = arith.addf %15, %14 : vector<1x8xf32>
    %17 = arith.divf %15, %16 : vector<1x8xf32>
    %c0_11 = arith.constant 0 : index
    %c0_12 = arith.constant 0 : index
    %18 = vector.load %arg6[%c0_11, %c0_12] : memref<1x8xf32, #tpu.memory_space<vmem>>, vector<1x8xf32>
    tpu.vector_store %arg6[%c0_11, %c0_12], %17 {strides = array<i32>} : memref<1x8xf32, #tpu.memory_space<vmem>>, vector<1x8xf32>,
    return
  }
  func.func @transform_0(%arg0: i32) -> (i32, i32) {
    %c0_i32 = arith.constant 0 : i32
    %c0_i32_0 = arith.constant 0 : i32
    return %arg0, %c0_i32 : i32, i32
  }
  func.func @transform_1(%arg0: i32) -> (i32, i32) {
    %c0_i32 = arith.constant 0 : i32
    %c0_i32_0 = arith.constant 0 : i32
    %c0_i32_1 = arith.constant 0 : i32
    return %c0_i32, %c0_i32_0 : i32, i32
  }
  func.func @transform_2(%arg0: i32) -> (i32, i32) {
    %c0_i32 = arith.constant 0 : i32
    %c0_i32_0 = arith.constant 0 : i32
    %c0_i32_1 = arith.constant 0 : i32
    return %c0_i32, %c0_i32_0 : i32, i32
  }
  func.func @transform_3(%arg0: i32) -> (i32, i32) {
    %c0_i32 = arith.constant 0 : i32
    %c0_i32_0 = arith.constant 0 : i32
    %c0_i32_1 = arith.constant 0 : i32
    return %c0_i32, %c0_i32_0 : i32, i32
  }
  func.func @transform_4(%arg0: i32) -> i32 {
    %c0_i32 = arith.constant 0 : i32
    %c0_i32_0 = arith.constant 0 : i32
    return %c0_i32 : i32
  }
  func.func @transform_5(%arg0: i32) -> (i32, i32) {
    %c0_i32 = arith.constant 0 : i32
    %c0_i32_0 = arith.constant 0 : i32
    return %c0_i32, %arg0 : i32, i32
  }
}

</mosaic_0001>

<bundles_post_ra>
// kernel: tpu_custom_call.1
= control target key start
LH: loop header
LB: loop body
LE: loop exit
PB: predicated region body
PF: predicated region fallthrough
CT: control target
= control target key end

     0   :  { %11 = vsyncpa [#allocation4], 0  ;;  %s411_s0 = inlined_call_operand.hbm [shape: bf16[8,14], index: 0, kind: input, shape index: {}]   ;;  %s412_s1 = inlined_call_operand.hbm [shape: bf16[14,64], index: 1, kind: input, shape index: {}]   ;;  %s413_s2 = inlined_call_operand.vmem [shape: f32[1,64], index: 2, kind: input, shape index: {}]   ;;  %s414_s3 = inlined_call_operand.vmem [shape: f32[1,64], index: 3, kind: input, shape index: {}]   ;;  %s415_s4 = inlined_call_operand.<no memory space> [shape: f32[1], index: 4, kind: input, shape index: {}]   ;;  %s416_s5 = inlined_call_operand.hbm [shape: f32[1,8], index: 5, kind: output, shape index: {}]  }
   0x1   :  { %12 = vsyncpa [#allocation7], 0 }
   0x2   :  { %13 = vsyncpa [#allocation5], 0  ;;  %s322_s18 = smov [#allocation3]   ;;  %s323_s20 = smov [#allocation6]  }
   0x3   :  { %s20_s19 = sshll.u32 %s322_s18, 4  ;;  %s29_s21 = sshll.u32 %s323_s20, 4  ;;  %s21_s19 = int_to_ptr.vmem [resolvable:$true] %s20_s19  ;;  %s359_s21 = int_to_ptr.vmem [resolvable:$true] %s29_s21 }
   0x4   :  { %s250_s24 = scalar_lea.hbm %s411_s0, 64 }
   0x5   :  { %p251_p0 = scmp.ne.s32.totalorder %s411_s0, %s250_s24  ;;  %p254_p1 = scmp.lt.u32.totalorder %s250_s24, %s411_s0 }
   0x7   :  { %p256_p2 = pnand %p254_p1, %p251_p0 }
   0x9   :  { %259 = shalt.err (!%p256_p2)
}
   0xa   :  { %s260_s29 = scalar_lea.vmem %s21_s19, 64  ;;  %p265_p4 = scmp.lt.s32.totalorder %s21_s19, %s21_s19 }
   0xb   :  { %p261_p3 = scmp.ne.s32.totalorder %s21_s19, %s260_s29  ;;  %p266_p5 = scmp.lt.s32.totalorder %s260_s29, %s260_s29 }
   0xd   :  { %p267_p6 = por %p266_p5, %p265_p4 }
   0xf   :  { %p268_p7 = pnand %p267_p6, %p261_p3 }
  0x11   :  { %271 = shalt.err (!%p268_p7)
}
  0x12   :  { %23 = dma.hbm_to_vmem [thread:$0]  %s411_s0, 64, %s21_s19, [#allocation4]  }
  0x13   :  { %s272_s9 = scalar_lea.hbm %s412_s1, 128 }
  0x14   :  { %p273_p8 = scmp.ne.s32.totalorder %s412_s1, %s272_s9  ;;  %p276_p9 = scmp.lt.u32.totalorder %s272_s9, %s412_s1 }
  0x16   :  { %p278_p10 = pnand %p276_p9, %p273_p8 }
  0x18   :  { %281 = shalt.err (!%p278_p10)
}
  0x19   :  { %s282_s14 = scalar_lea.vmem %s359_s21, 128  ;;  %p287_p12 = scmp.lt.s32.totalorder %s359_s21, %s359_s21 }
  0x1a   :  { %p283_p11 = scmp.ne.s32.totalorder %s359_s21, %s282_s14  ;;  %p288_p13 = scmp.lt.s32.totalorder %s282_s14, %s282_s14 }
  0x1c   :  { %p289_p0 = por %p288_p13, %p287_p12 }
  0x1e   :  { %p290_p1 = pnand %p289_p0, %p283_p11 }
  0x20   :  { %293 = shalt.err (!%p290_p1)
}
  0x21   :  { %s324_s0 = smov 64   ;;  %s325_s15 = smov 4  }
  0x22   :  { %35 = dma.hbm_to_vmem [thread:$0]  %s412_s1, 128, %s359_s21, [#allocation7], %s324_s0, %s324_s0, %s325_s15  }
  0x23   :  { %316 = dma.done.wait [#allocation4], 64  }
  0x24   :  { %317 = vsyncadd [#allocation4], 4294967232 }
  0x25   :  { %318 = dma.done.wait [#allocation7], 128  }
  0x26   :  { %319 = vsyncadd [#allocation7], 4294967168  ;;  %v326_v0 = vmov 0.0   ;;  %vm327_vm0 = vmmov 0   ;;  %vm68_vm1 = vcmask 1046528   ;;  %vm64_vm2 = vcmask 113664  }
  0x27   :  { %227 = vmatprep.subr.bf16.mxu0 %v326_v0  ;;  %229 = vmatprep.mubr.msk.bf16.mxu0 %vm327_vm0, %v326_v0  ;;  %v245_v1 = vld [vmem:[#allocation6] sm:$0x7f]   ;;  %v49_v3 = vld [vmem:[#allocation3] sm:$0xf]  ;;  %vm116_vm3 = vcmask 523264   ;;  %v115_v12 = vstv %s415_s4  ;;  %vm199_vm4 = vcmask 57344  }
  0x28   :  { %233 = vmatprep.subr.mxu1 %v326_v0  ;;  %235 = vmatprep.mubr.msk.f32.mxu1 %vm327_vm0, %v326_v0  ;;  %v70_v2 = vsel %vm68_vm1, %v245_v1, 0  ;;  %v217_v4 = vld [vmem:[%s413_s2] ss:$0 sm:$0xff]  ;;  %s328_s2 = smov [#allocation8]  }
  0x29   :  { %228 = vmatpush3.bf16.msra.mxu0 %v70_v2  ;;  %v113_v11 = vld [vmem:[%s414_s3] sm:$0x1]  ;;  %s207_s23 = sshll.u32 %s328_s2, 4  ;;  %s208_s23 = int_to_ptr.vmem [resolvable:$true] %s207_s23 }
  0x2a   :  { %s294_s3 = scalar_lea.vmem %s208_s23, 16  ;;  %s298_s24 = scalar_lea.vmem %s208_s23, 32 }
  0x2b   :  { %p295_p2 = scmp.ne.s32.totalorder %s208_s23, %s294_s3  ;;  %p299_p3 = scmp.lt.s32.totalorder %s208_s23, %s208_s23 }
  0x2c   :  { %230 = vmatmul.mubr.msk.bf16.vlgmr.msra.gmra.mrb[0].mxu0 %vm64_vm2, %v49_v3  ;;  %p300_p4 = scmp.lt.s32.totalorder %s298_s24, %s294_s3 }
  0x2e   :  { %p301_p5 = por %p300_p4, %p299_p3 }
  0x30   :  { %p302_p6 = pnand %p301_p5, %p295_p2 }
  0xff   :  { %v106_v5 = vpop.f32.mrb[0].mxu0 }
 0x100   :  { %v107_v6 = vadd.f32 %v217_v4, %v106_v5  ;;  %v231_v7 = vpop.f32.mrb[1].mxu0 }
 0x101   :  { %v109_v8 = vpop.f32.mrb[2].mxu0 }
 0x102   :  { %v112_v9 = vmax.f32 %v107_v6, 0.0  ;;  %v232_v10 = vpop.f32.mrb[3].mxu0 }
 0x104   :  { %234 = vmatpush3.xpose.msk.msra.mxu1 %vm116_vm3, %v112_v9 }
 0x107   :  { %236 = vmatmul.mubr.msk.f32.vlgmr.msra.gmra.mrb[0].mxu1 %vm116_vm3, %v113_v11 }
 0x1da   :  { %v189_v13 = vpop.f32.mrb[0].mxu1 }
 0x1db   :  { %v190_v14 = vadd.f32 %v189_v13, %v115_v12  ;;  %v237_v15 = vpop.f32.mrb[1].mxu1 }
 0x1dd   :  { %v222_v16 = vmul.f32 -1.442695, %v190_v14 }
 0x1df   :  { %246 = vpow2.f32 %v222_v16 }
 0x1e9   :  { %v247_v17 = vpop.eup %246 }
 0x1ea   :  { %v196_v18 = vadd.f32 1.0, %v247_v17 }
 0x1ec   :  { %248 = vrcp.f32 %v196_v18 }
 0x1f6   :  { %v249_v19 = vpop.eup %248 }
 0x1f7   :  { %200 = vst.msk [vmem:[#allocation8] sm:$0x1] %vm199_vm4, %v249_v19 }
 0x1f8   :  { %305 = shalt.err (!%p302_p6)
}
 0x1f9   :  { %s306_s26 = scalar_lea.hbm %s416_s5, 16 }
 0x1fa   :  { %p307_p7 = scmp.ne.s32.totalorder %s416_s5, %s306_s26  ;;  %p310_p8 = scmp.lt.u32.totalorder %s306_s26, %s416_s5 }
 0x1fc   :  { %p312_p9 = pnand %p310_p8, %p307_p7 }
 0x1fe   :  { %315 = shalt.err (!%p312_p9)
}
 0x1ff   :  { %210 = dma.vmem_to_hbm [thread:$0]  %s208_s23, 16, %s416_s5, [#allocation5]  }
 0x200   :  { %320 = dma.done.wait [#allocation5], 16  }
 0x201   :  { %321 = vsyncadd [#allocation5], 4294967280 }
 0x202   :  { %214 = vsyncpa [#allocation4], 1 }
 0x203   :  { %215 = vsyncpa [#allocation7], 1 }
 0x204   :  { %216 = vsyncpa [#allocation5], 1 }

</bundles_post_ra>
